<compile_context>
chip_gen: v5e
topology: v5e:2x2
jax: 0.10.0
libtpu: 0.0.40
codegen_flags: <defaults>
</compile_context>

<pallas_src>
import functools

import jax
import jax.numpy as jnp
from jax import lax
from jax.experimental import pallas as pl
from jax.experimental.pallas import tpu as pltpu

F32 = jnp.float32
HIGHEST = lax.Precision.HIGHEST

_TARGET_BLOCK_BYTES = 4 << 20          # ~4 MiB per (B, TC, TL) block
_VMEM_LIMIT_BYTES = 32 * 1024 * 1024   # > v5e default (16 MiB), <= v7x physical (64 MiB)


@functools.lru_cache(maxsize=None)
def _v7x_like():
    """True when the local device looks like a v7x (2 TensorCores/chip)."""
    try:
        kind = jax.devices()[0].device_kind.lower()
    except Exception:
        return False
    return ("v7" in kind) or ("7x" in kind)


def _largest_divisor_multiple(full, quantum, cap):
    """Largest d with d | full, quantum | d, d <= cap.  Falls back to `quantum`
    (smallest legal tile) if nothing fits the cap; None if full % quantum != 0."""
    if full % quantum != 0:
        return None
    best = quantum
    n = full // quantum
    for m in range(1, n + 1):
        if n % m == 0 and m * quantum <= cap:
            best = max(best, m * quantum)
    return best


def _pick_tiles(B, C, L, itemsize, target_bytes):
    """VMEM-budget tile picker.  Returns (TC, TL) with C % TC == 0, L % TL == 0."""
    def nbytes(tc, tl):
        return B * tc * tl * itemsize

    # Whole array fits in one budget block -> single full-extent block, no grid.
    if nbytes(C, L) <= target_bytes:
        return C, L

    # Tile the lane (L) axis first.
    cap_l = target_bytes // max(1, B * C * itemsize)
    tl = _largest_divisor_multiple(L, 128, cap_l)
    if tl is None:
        # TODO(synk): L not a multiple of 128 cannot be lane-tiled legally;
        # fall back to the full extent (fine for this module's power-of-2 L).
        tl = L

    tc = C
    # Still over budget (channel-heavy layer): tile channels too.  Needs
    # 128-multiple slices so the sliced weight/bias blocks stay lane-dense.
    if nbytes(tc, tl) > target_bytes:
        cap_c = target_bytes // max(1, B * tl * itemsize)
        tc2 = _largest_divisor_multiple(C, 128, cap_c)
        if tc2 is not None:
            tc = tc2
    return tc, tl


@functools.lru_cache(maxsize=None)
def _build_affine_call(B, C, L, Cin, use_affine_level, x_dtype_str, TC, TL,
                       core_parallel):
    x_dtype = jnp.dtype(x_dtype_str)
    F_out = C * (2 if use_affine_level else 1)

    # ---- kernel bodies (block shapes: x (B,TC,TL), ne (B,Cin), w (Cin,TC), b (1,TC))
    if use_affine_level:
        def kernel(x_ref, ne_ref, wg_ref, bg_ref, wb_ref, bb_ref, o_ref):
            ne = ne_ref[...]                                             # (B, Cin) f32
            gamma = jnp.dot(ne, wg_ref[...], precision=HIGHEST,
                            preferred_element_type=F32) + bg_ref[...]    # (B, TC)
            beta = jnp.dot(ne, wb_ref[...], precision=HIGHEST,
                           preferred_element_type=F32) + bb_ref[...]     # (B, TC)
            xb = x_ref[...].astype(F32)                                  # f32 in-register
            o_ref[...] = ((1.0 + gamma)[:, :, None] * xb
                          + beta[:, :, None]).astype(o_ref.dtype)
        n_w = 2
    else:
        def kernel(x_ref, ne_ref, w_ref, b_ref, o_ref):
            shift = jnp.dot(ne_ref[...], w_ref[...], precision=HIGHEST,
                            preferred_element_type=F32) + b_ref[...]     # (B, TC)
            xb = x_ref[...].astype(F32)
            o_ref[...] = (xb + shift[:, :, None]).astype(o_ref.dtype)
        n_w = 1

    out_shape = jax.ShapeDtypeStruct((B, C, L), x_dtype)
    itemsize = x_dtype.itemsize
    cost = pl.CostEstimate(
        flops=2 * B * Cin * F_out + 3 * B * C * L,
        transcendentals=0,
        bytes_accessed=2 * B * C * L * itemsize
                       + 4 * (B * Cin + Cin * F_out + F_out))
    n_l, n_c = L // TL, C // TC

    # ---- small arrays: one full-extent block resident in VMEM, no grid/pipeline
    if n_l == 1 and n_c == 1:
        vmem = pl.BlockSpec(memory_space=pltpu.MemorySpace.VMEM)
        return pl.pallas_call(
            kernel,
            out_shape=out_shape,
            in_specs=[vmem] * (2 + 2 * n_w),
            out_specs=vmem,
            compiler_params=pltpu.CompilerParams(
                vmem_limit_bytes=_VMEM_LIMIT_BYTES),
            cost_estimate=cost,
        )

    # ---- large arrays: lane-dense (and optionally channel-tiled) streaming grid
    x_spec = pl.BlockSpec((B, TC, TL), lambda l, c: (0, c, l))
    ne_spec = pl.BlockSpec((B, Cin), lambda l, c: (0, 0))
    w_spec = pl.BlockSpec((Cin, TC), lambda l, c: (0, c))
    b_spec = pl.BlockSpec((1, TC), lambda l, c: (0, c))
    in_specs = [x_spec, ne_spec] + [w_spec, b_spec] * n_w

    if core_parallel and n_l >= 2:
        sems = (pltpu.CORE_PARALLEL, pltpu.PARALLEL)
    elif core_parallel and n_c >= 2:
        sems = (pltpu.PARALLEL, pltpu.CORE_PARALLEL)
    else:
        sems = (pltpu.PARALLEL, pltpu.PARALLEL)

    return pl.pallas_call(
        kernel,
        out_shape=out_shape,
        grid=(n_l, n_c),
        in_specs=in_specs,
        out_specs=x_spec,
        compiler_params=pltpu.CompilerParams(
            dimension_semantics=sems,
            vmem_limit_bytes=_VMEM_LIMIT_BYTES),
        cost_estimate=cost,
    )


@functools.partial(jax.jit,
                   static_argnames=("use_affine_level", "target_block_bytes"))
def feature_wise_affine(x, noise_embed, w, b, *, use_affine_level=False,
                        target_block_bytes=_TARGET_BLOCK_BYTES):
    """x: (B, C, L) in its native dtype, noise_embed: (B, Cin),
    w: (F, Cin) / b: (F,) in PyTorch nn.Linear layout, F = C*(1+use_affine_level).
    Output dtype == x.dtype."""
    B, C, L = x.shape
    Cin = noise_embed.shape[-1]
    F_out = w.shape[0]
    assert F_out == C * (2 if use_affine_level else 1), (F_out, C, use_affine_level)

    TC, TL = _pick_tiles(B, C, L, jnp.dtype(x.dtype).itemsize, target_block_bytes)
    call = _build_affine_call(B, C, L, Cin, bool(use_affine_level),
                              str(jnp.dtype(x.dtype)), TC, TL, _v7x_like())

    # Tiny parameter reshapes hoisted out of the kernel (fused away by XLA).
    w_t = jnp.transpose(w).astype(F32)          # (Cin, F)
    b2 = b.reshape(1, F_out).astype(F32)
    ne = noise_embed.astype(F32)

    if use_affine_level:
        wg, wb = w_t[:, :C], w_t[:, C:]         # matches torch .chunk(2, dim=1)
        bg, bb = b2[:, :C], b2[:, C:]
        return call(x, ne, wg, bg, wb, bb)
    return call(x, ne, w_t, b2)


# -----------------------------------------------------------------------------
# Pure-JAX reference (mirrors the PyTorch forward exactly)
# -----------------------------------------------------------------------------
def feature_wise_affine_ref(x, noise_embed, w, b, use_affine_level):
    B = x.shape[0]
    mod = jnp.dot(noise_embed, w.T, precision=HIGHEST) + b          # (B, F)
    mod = mod.reshape(B, -1, 1)
    if use_affine_level:
        gamma, beta = jnp.split(mod, 2, axis=1)
        return (1.0 + gamma) * x + beta
    return x + mod


def init_linear(key, fin, fout):
    std = 1.0 / jnp.sqrt(jnp.asarray(fin, F32))
    return {"w": std * jax.random.normal(key, (fout, fin), F32),
            "b": jnp.zeros((fout,), F32)}


# -----------------------------------------------------------------------------
if __name__ == "__main__":
    B, IN_CH, OUT_CH, L = 2, 32, 8, 512   # x: (B, OUT_CH, L), noise_embed: (B, IN_CH)

    key = jax.random.PRNGKey(0)
    kx, kn, kw1, kw2 = jax.random.split(key, 4)
    x = jax.random.normal(kx, (B, OUT_CH, L), F32)
    noise_embed = jax.random.normal(kn, (B, IN_CH), F32)

    p_add = init_linear(kw1, IN_CH, OUT_CH)        # use_affine_level=False
    p_aff = init_linear(kw2, IN_CH, 2 * OUT_CH)    # use_affine_level=True

    ref_add = feature_wise_affine_ref(x, noise_embed, p_add["w"], p_add["b"], False)
    ref_aff = feature_wise_affine_ref(x, noise_embed, p_aff["w"], p_aff["b"], True)

    # 1) Small shape -> single full-extent VMEM block (no grid / pipeline).
    out_add = jax.block_until_ready(
        feature_wise_affine(x, noise_embed, p_add["w"], p_add["b"],
                            use_affine_level=False))
    out_aff = jax.block_until_ready(
        feature_wise_affine(x, noise_embed, p_aff["w"], p_aff["b"],
                            use_affine_level=True))
    assert out_add.shape == (B, OUT_CH, L) and out_add.dtype == x.dtype
    assert out_aff.shape == (B, OUT_CH, L) and out_aff.dtype == x.dtype
    assert bool(jnp.all(jnp.isfinite(out_add))) and bool(jnp.all(jnp.isfinite(out_aff)))
    assert bool(jnp.allclose(out_add, ref_add, atol=1e-4, rtol=1e-4))
    assert bool(jnp.allclose(out_aff, ref_aff, atol=1e-4, rtol=1e-4))

    # 2) Artificially tiny block budget -> exercises the tiled / gridded path.
    out_add_t = jax.block_until_ready(
        feature_wise_affine(x, noise_embed, p_add["w"], p_add["b"],
                            use_affine_level=False, target_block_bytes=8192))
    out_aff_t = jax.block_until_ready(
        feature_wise_affine(x, noise_embed, p_aff["w"], p_aff["b"],
                            use_affine_level=True, target_block_bytes=8192))
    assert bool(jnp.allclose(out_add_t, ref_add, atol=1e-4, rtol=1e-4))
    assert bool(jnp.allclose(out_aff_t, ref_aff, atol=1e-4, rtol=1e-4))

    # 3) bf16 activations stream bf16 over HBM and the output stays bf16.
    x_bf = x.astype(jnp.bfloat16)
    out_bf = jax.block_until_ready(
        feature_wise_affine(x_bf, noise_embed, p_aff["w"], p_aff["b"],
                            use_affine_level=True))
    ref_bf = feature_wise_affine_ref(x_bf.astype(F32), noise_embed,
                                     p_aff["w"], p_aff["b"], True)
    assert out_bf.dtype == jnp.bfloat16 and out_bf.shape == (B, OUT_CH, L)
    assert bool(jnp.allclose(out_bf.astype(F32), ref_bf, atol=5e-2, rtol=5e-2))

    print("KERNEL_OK")
</pallas_src>

<mosaic_0001>
module attributes {stable_mosaic.version = 11 : i64} {
  func.func @kernel(%arg0: memref<2x8x512xf32, #tpu.memory_space<vmem>>, %arg1: memref<2x32xf32, #tpu.memory_space<vmem>>, %arg2: memref<32x8xf32, #tpu.memory_space<vmem>>, %arg3: memref<1x8xf32, #tpu.memory_space<vmem>>, %arg4: memref<2x8x512xf32, #tpu.memory_space<vmem>>) attributes {dimension_semantics = [], scalar_prefetch = 0 : i64, scratch_operands = 0 : i64, tpu.core_type = #tpu.core_type<tc>} {
    %c0 = arith.constant 0 : index
    %c0_0 = arith.constant 0 : index
    %0 = vector.load %arg1[%c0, %c0_0] : memref<2x32xf32, #tpu.memory_space<vmem>>, vector<2x32xf32>
    %c0_1 = arith.constant 0 : index
    %c0_2 = arith.constant 0 : index
    %1 = vector.load %arg2[%c0_1, %c0_2] : memref<32x8xf32, #tpu.memory_space<vmem>>, vector<32x8xf32>
    %cst = arith.constant dense<0.000000e+00> : vector<2x8xf32>
    %2 = tpu.matmul %0, %1, %cst {dimension_numbers = #tpu.dot_dimension_numbers<[1], [0], [0], [1], [0, 0, 1, 1], [], []>, precision = #tpu.contract_precision<fp32>} : vector<2x32xf32>, vector<32x8xf32>, vector<2x8xf32> -> vector<2x8xf32>
    %c0_3 = arith.constant 0 : index
    %c0_4 = arith.constant 0 : index
    %3 = vector.load %arg3[%c0_3, %c0_4] : memref<1x8xf32, #tpu.memory_space<vmem>>, vector<1x8xf32>
    %4 = vector.broadcast %3 : vector<1x8xf32> to vector<2x8xf32>
    %5 = arith.addf %2, %4 : vector<2x8xf32>
    %c0_5 = arith.constant 0 : index
    %c0_6 = arith.constant 0 : index
    %c0_7 = arith.constant 0 : index
    %6 = vector.load %arg0[%c0_5, %c0_6, %c0_7] : memref<2x8x512xf32, #tpu.memory_space<vmem>>, vector<2x8x512xf32>
    %7 = vector.shape_cast %5 : vector<2x8xf32> to vector<2x8x1xf32>
    %8 = vector.broadcast %7 : vector<2x8x1xf32> to vector<2x8x512xf32>
    %9 = arith.addf %6, %8 : vector<2x8x512xf32>
    %c0_8 = arith.constant 0 : index
    %c0_9 = arith.constant 0 : index
    %c0_10 = arith.constant 0 : index
    %10 = vector.load %arg4[%c0_8, %c0_9, %c0_10] : memref<2x8x512xf32, #tpu.memory_space<vmem>>, vector<2x8x512xf32>
    tpu.vector_store %arg4[%c0_8, %c0_9, %c0_10], %9 {strides = array<i32>} : memref<2x8x512xf32, #tpu.memory_space<vmem>>, vector<2x8x512xf32>,
    return
  }
}

</mosaic_0001>

<bundles_post_ra>
// kernel: feature_wise_affine.1
= control target key start
LH: loop header
LB: loop body
LE: loop exit
PB: predicated region body
PF: predicated region fallthrough
CT: control target
= control target key end

     0   :  { %9 = vsyncpa [#allocation3], 0  ;;  %s406_s0 = inlined_call_operand.hbm [shape: f32[2,8,512], index: 0, kind: input, shape index: {}]   ;;  %s407_s1 = inlined_call_operand.vmem [shape: f32[2,32], index: 1, kind: input, shape index: {}]   ;;  %s408_s2 = inlined_call_operand.vmem [shape: f32[32,8], index: 2, kind: input, shape index: {}]   ;;  %s409_s3 = inlined_call_operand.vmem [shape: f32[1,8], index: 3, kind: input, shape index: {}]   ;;  %s410_s4 = inlined_call_operand.hbm [shape: f32[2,8,512], index: 4, kind: output, shape index: {}]  }
   0x1   :  { %10 = vsyncpa [#allocation4], 0  ;;  %s15_s17 = sshll.u32 %s406_s0, 4  ;;  %s347_s18 = smov [#allocation2]   ;;  %s16_s17 = int_to_ptr.hbm [resolvable:$true] %s15_s17 }
   0x2   :  { %s17_s19 = sshll.u32 %s347_s18, 4  ;;  %s348_s20 = smov 512   ;;  %s18_s19 = int_to_ptr.vmem [resolvable:$true] %s17_s19 }
   0x3   :  { %s349_s21 = smov 32  }
   0x4   :  { %23 = dma.hbm_to_vmem [thread:$0]  %s16_s17, 1024, %s18_s19, [#allocation3], %s348_s20, %s348_s20, %s349_s21  }
   0x5   :  { %343 = dma.done.wait [#allocation3], 1024  }
   0x6   :  { %344 = vsyncadd [#allocation3], 4294966272  ;;  %vm43_vm0 = vcmask 261120   ;;  %v38_v0 = vld [vmem:[%s408_s2 + $0x18] sm:$0xff]  ;;  %v37_v1 = vld [vmem:[%s408_s2 + $0x10] sm:$0xff]  ;;  %v241_v31 = vlaneseq  ;;  %s276_s8 = sshll.u32 %s410_s4, 4  ;;  %s277_s8 = int_to_ptr.hbm [resolvable:$true] %s276_s8 }
   0x7   :  { %v36_v2 = vld [vmem:[%s408_s2 + $0x8] sm:$0xff]  ;;  %v59_v3 = vand.u32 4294901760, %v38_v0  ;;  %v61_v4 = vand.u32 4294901760, %v37_v1  ;;  %v35_v6 = vld [vmem:[%s408_s2] sm:$0xff]  ;;  %v234_v50 = vld [vmem:[#allocation2 + $0x10] sm:$0xff] }
   0x8   :  { %v63_v5 = vand.u32 4294901760, %v36_v2  ;;  %v34_v7 = vld [vmem:[%s407_s1] sm:$0x3]  ;;  %v65_v8 = vand.u32 4294901760, %v35_v6  ;;  %v242_v32 = vshrl.u32 %v241_v31, 7  ;;  %v233_v49 = vld [vmem:[#allocation2 + $0x8] sm:$0xff] }
   0x9   :  { %v45_v9 = vsel %vm43_vm0, %v34_v7, 0  ;;  %v89_v10 = vsub.f32 %v38_v0, %v59_v3  ;;  %60 = vmatpush.msra.mxu0 %v59_v3  ;;  %v95_v11 = vsub.f32 %v37_v1, %v61_v4  ;;  %160 = vmatpush.msra.mxu3 %v59_v3  ;;  %v294_v33 = vld [vmem:[%s409_s3] ss:$0 sm:$0xff]  ;;  %v235_v51 = vld [vmem:[#allocation2 + $0x18] sm:$0xff]  ;;  %v237_v58 = vld [vmem:[#allocation2 + $0x28] sm:$0xff]  ;;  %s350_s3 = smov [#allocation5]  }
   0xa   :  { %v101_v12 = vsub.f32 %v36_v2, %v63_v5  ;;  %v67_v13 = vand.u32 4294901760, %v45_v9  ;;  %v107_v14 = vsub.f32 %v35_v6, %v65_v8  ;;  %293 = vset.pattern.permute.xlu0 %v242_v32  ;;  %v232_v48 = vld [vmem:[#allocation2] sm:$0xff]  ;;  %v238_v59 = vld [vmem:[#allocation2 + $0x30] sm:$0xff]  ;;  %v239_v60 = vld [vmem:[#allocation2 + $0x38] sm:$0xff]  ;;  %s274_s5 = sshll.u32 %s350_s3, 4  ;;  %s275_s5 = int_to_ptr.vmem [resolvable:$true] %s274_s5 }
   0xb   :  { %131 = vmatpush.msra.mxu2 %v89_v10  ;;  %62 = vmatpush.msra.mxu0 %v61_v4  ;;  %v90_v15 = vand.u32 4294901760, %v89_v10  ;;  %v96_v16 = vand.u32 4294901760, %v95_v11  ;;  %v236_v57 = vld [vmem:[#allocation2 + $0x20] sm:$0xff] }
   0xc   :  { %v68_v17 = vsub.f32 %v45_v9, %v67_v13  ;;  %v102_v18 = vand.u32 4294901760, %v101_v12  ;;  %162 = vmatpush.msra.mxu3 %v61_v4  ;;  %v108_v19 = vand.u32 4294901760, %v107_v14 }
   0xd   :  { %134 = vmatpush.msra.mxu2 %v95_v11  ;;  %v91_v20 = vsub.f32 %v89_v10, %v90_v15  ;;  %64 = vmatpush.msra.mxu0 %v63_v5  ;;  %v97_v21 = vsub.f32 %v95_v11, %v96_v16 }
   0xe   :  { %v103_v22 = vsub.f32 %v101_v12, %v102_v18  ;;  %v69_v23 = vand.u32 4294901760, %v68_v17  ;;  %164 = vmatpush.msra.mxu3 %v63_v5  ;;  %v109_v27 = vsub.f32 %v107_v14, %v108_v19 }
   0xf   :  { %v92_v24 = vand.u32 4294901760, %v91_v20  ;;  %137 = vmatpush.msra.mxu2 %v101_v12  ;;  %v98_v25 = vand.u32 4294901760, %v97_v21  ;;  %66 = vmatpush.msra.mxu0 %v65_v8 }
  0x10   :  { %v70_v26 = vsub.f32 %v68_v17, %v69_v23  ;;  %166 = vmatpush.msra.mxu3 %v65_v8  ;;  %v104_v28 = vand.u32 4294901760, %v103_v22  ;;  %v110_v30 = vand.u32 4294901760, %v109_v27 }
  0x11   :  { %189 = vmatpush.msrb.mxu0 %v90_v15  ;;  %93 = vmatpush.msra.mxu1 %v92_v24 }
  0x12   :  { %140 = vmatpush.msra.mxu2 %v107_v14  ;;  %v71_v29 = vand.u32 4294901760, %v70_v26  ;;  %170 = vmatmul.f32.vlgmr.msra.gmra.mxu3 %v69_v23 }
  0x13   :  { %143 = vmatmul.f32.vlgmr.msra.gmra.mxu2 %v68_v17  ;;  %99 = vmatpush.msra.mxu1 %v98_v25 }
  0x14   :  { %72 = vmatmul.f32.vlgmr.msra.gmra.mxu0 %v71_v29 }
  0x15   :  { %193 = vmatpush.msrb.mxu0 %v96_v16  ;;  %105 = vmatpush.msra.mxu1 %v104_v28 }
  0x17   :  { %197 = vmatpush.msrb.mxu0 %v102_v18  ;;  %111 = vmatpush.msra.mxu1 %v110_v30 }
  0x18   :  { %113 = vmatmul.f32.vlgmr.msra.gmra.mxu1 %v67_v13 }
  0x19   :  { %201 = vmatpush.msrb.mxu0 %v108_v19  ;;  %220 = vmatpush.msrb.mxu1 %v59_v3 }
  0x1b   :  { %222 = vmatpush.msrb.mxu1 %v61_v4 }
  0x1c   :  { %203 = vmatmul.f32.vlgmr.msrb.gmra.mxu0 %v67_v13 }
  0x1d   :  { %224 = vmatpush.msrb.mxu1 %v63_v5 }
  0x1f   :  { %226 = vmatpush.msrb.mxu1 %v65_v8 }
  0x20   :  { %228 = vmatmul.f32.vlgmr.msrb.gmra.mxu1 %v67_v13 }
  0x91   :  { %v73_v34 = vpop.f32.mrf.mxu0 }
  0x92   :  { %v74_v35 = vadd.f32 %v294_v33, %v73_v34 }
  0x95   :  { %v114_v36 = vpop.f32.mrf.mxu1  ;;  %v171_v39 = vpop.f32.mrf.mxu3 }
  0x96   :  { %v144_v37 = vpop.f32.mrf.mxu2  ;;  %v115_v38 = vadd.f32 %v114_v36, %v74_v35 }
  0x98   :  { %v145_v40 = vadd.f32 %v144_v37, %v115_v38 }
  0x99   :  { %v204_v41 = vpop.f32.mrf.mxu0 }
  0x9a   :  { %v172_v42 = vadd.f32 %v171_v39, %v145_v40 }
  0x9c   :  { %v205_v43 = vadd.f32 %v204_v41, %v172_v42 }
  0x9d   :  { %v229_v44 = vpop.f32.mrf.mxu1 }
  0x9e   :  { %v230_v45 = vadd.f32 %v229_v44, %v205_v43 }
  0xa0   :  { %v240_v46 = vperm.slane %v230_v45, 0  ;;  %v247_v47 = vperm.slane %v230_v45, 1 }
  0xa2   :  { %245 = vperm.xlu0 %293, %v240_v46  }
  0xaa   :  { %252 = vperm.xlu0 %293, %v247_v47  }
 0x114   :  { %v246_v52 = vpop.permute.xlu0 %245 }
 0x115   :  { %v254_v53 = vadd.f32 %v246_v52, %v232_v48  ;;  %v255_v54 = vadd.f32 %v246_v52, %v233_v49  ;;  %v256_v55 = vadd.f32 %v246_v52, %v234_v50  ;;  %v257_v56 = vadd.f32 %v246_v52, %v235_v51 }
 0x117   :  { %262 = vst [vmem:[#allocation5] sm:$0xff] %v254_v53 }
 0x118   :  { %263 = vst [vmem:[#allocation5 + $0x8] sm:$0xff] %v255_v54 }
 0x119   :  { %264 = vst [vmem:[#allocation5 + $0x10] sm:$0xff] %v256_v55 }
 0x11a   :  { %265 = vst [vmem:[#allocation5 + $0x18] sm:$0xff] %v257_v56 }
 0x11c   :  { %v253_v61 = vpop.permute.xlu0 %252 }
 0x11d   :  { %v258_v62 = vadd.f32 %v253_v61, %v236_v57  ;;  %v259_v63 = vadd.f32 %v253_v61, %v237_v58  ;;  %v260_v0 = vadd.f32 %v253_v61, %v238_v59  ;;  %v261_v1 = vadd.f32 %v253_v61, %v239_v60 }
 0x11f   :  { %266 = vst [vmem:[#allocation5 + $0x20] sm:$0xff] %v258_v62 }
 0x120   :  { %267 = vst [vmem:[#allocation5 + $0x28] sm:$0xff] %v259_v63 }
 0x121   :  { %268 = vst [vmem:[#allocation5 + $0x30] sm:$0xff] %v260_v0 }
 0x122   :  { %269 = vst [vmem:[#allocation5 + $0x38] sm:$0xff] %v261_v1 }
 0x123   :  { %282 = dma.vmem_to_hbm [thread:$0]  %s275_s5, 1024, %s277_s8, [#allocation4], %s348_s20, %s348_s20, %s349_s21  }
 0x124   :  { %345 = dma.done.wait [#allocation4], 1024  }
 0x125   :  { %346 = vsyncadd [#allocation4], 4294966272 }
 0x126   :  { %287 = vsyncpa [#allocation3], 1 }
 0x127   :  { %288 = vsyncpa [#allocation4], 1 }

</bundles_post_ra>
